<compile_context>
chip_gen: v7x
topology: tpu7x:2x2x1
jax: 0.10.0
libtpu: 0.0.40
codegen_flags: <defaults>
</compile_context>

<pallas_src>
import functools

import jax
import jax.numpy as jnp
from jax import lax
from jax.experimental import pallas as pl
from jax.experimental.pallas import tpu as pltpu


def _resblock_kernel(x_ref, w1_ref, b1_ref, w2_ref, b2_ref, o_ref, *, H, BWC):
    """Whole-batch ResBlock in the fused (H, B*W*C) layout.

    x_ref  : (H, BWC)       f32 input, lane index = b*W*C + w*C + c
    w*_ref : (BWC, 3*BWC)   bf16 fused conv weight (3 vertical taps along lanes)
    b*_ref : (1, BWC)       f32 bias, tiled across batch and W
    o_ref  : (H, BWC)       f32 output
    """
    x = x_ref[...]                                           # (H, BWC) f32

    # Constant 0/1 shift matrices (built on the VPU from 2-D iotas, zero cost):
    #   p_lo[h, k] = 1 iff k == h - 1   ->  (p_lo @ A)[h] = A[h-1], row 0 -> 0
    #   p_hi[h, k] = 1 iff k == h + 1   ->  (p_hi @ A)[h] = A[h+1], row H-1 -> 0
    # They implement the vertical conv taps + zero padding purely on the MXU.
    r = lax.broadcasted_iota(jnp.int32, (H, H), 0)
    c = lax.broadcasted_iota(jnp.int32, (H, H), 1)
    p_lo = (r == c + 1).astype(jnp.float32)
    p_hi = (c == r + 1).astype(jnp.float32)

    def conv3x3(act, w_ref, b_ref):
        # One wide matmul computes all three vertical-tap partial sums side by side
        # on the lane axis: a[:, dh*BWC:(dh+1)*BWC] = act @ W_dh  (dh = 0, 1, 2).
        a = jnp.dot(act.astype(jnp.bfloat16), w_ref[...],
                    preferred_element_type=jnp.float32)       # (H, 3*BWC) f32
        a0 = a[:, 0:BWC]            # needs rows shifted down by one (x[h-1] tap)
        a1 = a[:, BWC:2 * BWC]      # centered tap
        a2 = a[:, 2 * BWC:3 * BWC]  # needs rows shifted up by one (x[h+1] tap)
        out = (jnp.dot(p_lo, a0, preferred_element_type=jnp.float32)
               + a1
               + jnp.dot(p_hi, a2, preferred_element_type=jnp.float32))
        return out + b_ref[...]                               # (1, BWC) broadcast

    # r = relu(conv1(x)); r = relu(conv2(r)); out = x + r   (matches the PyTorch module)
    r1 = jnp.maximum(conv3x3(x, w1_ref, b1_ref), 0.0)
    r2 = jnp.maximum(conv3x3(r1, w2_ref, b2_ref), 0.0)
    o_ref[...] = x + r2


def _fused_weight(w_hwio, B, W, C):
    """(3, 3, Cin, Cout) HWIO conv weight -> (B*W*C, 3*B*W*C) bf16 fused weight.

    For each vertical tap dh, build the banded (W*C, W*C) matrix
        wb[wi*C + ci, wo*C + co] = w[dh, wi - wo + 1, ci, co]  (0 outside the band)
    which applies the 3 horizontal taps + channel contraction (and the zero padding
    along W via the band edges) in one matmul.  Make it block-diagonal over batch
    (lane = b*W*C + w*C + c), then lane-concatenate the 3 dh blocks.
    """
    wi = jnp.arange(W)[:, None]
    wo = jnp.arange(W)[None, :]
    dw = wi - wo + 1                                           # (W, W)
    valid = ((dw >= 0) & (dw <= 2)).astype(w_hwio.dtype)
    dw_c = jnp.clip(dw, 0, 2)
    eye_b = jnp.eye(B, dtype=w_hwio.dtype)
    blocks = []
    for dh in range(3):
        band = w_hwio[dh][dw_c] * valid[..., None, None]       # (W, W, Cin, Cout)
        band = band.transpose(0, 2, 1, 3).reshape(W * C, W * C)
        blocks.append(jnp.kron(eye_b, band))                   # (B*W*C, B*W*C)
    return jnp.concatenate(blocks, axis=1).astype(jnp.bfloat16)


def resblock_pallas(x_nhwc, w1, b1, w2, b2):
    """x_nhwc: (B, H, W, C) f32; w*: (3, 3, C, C) HWIO; b*: (C,)."""
    B, H, W, C = x_nhwc.shape
    BWC = B * W * C

    # Repack activations: (B, H, W, C) -> (H, B*W*C); lane index = b*W*C + w*C + c.
    x_f = jnp.transpose(x_nhwc, (1, 0, 2, 3)).reshape(H, BWC)

    w1_f = _fused_weight(w1, B, W, C)                          # (BWC, 3*BWC) bf16
    w2_f = _fused_weight(w2, B, W, C)
    b1_f = jnp.tile(b1.astype(jnp.float32), B * W).reshape(1, BWC)
    b2_f = jnp.tile(b2.astype(jnp.float32), B * W).reshape(1, BWC)

    kernel = functools.partial(_resblock_kernel, H=H, BWC=BWC)
    vmem = pl.BlockSpec(memory_space=pltpu.MemorySpace.VMEM)

    out = pl.pallas_call(
        kernel,
        out_shape=jax.ShapeDtypeStruct((H, BWC), jnp.float32),
        in_specs=[vmem, vmem, vmem, vmem, vmem],
        out_specs=vmem,
    )(x_f, w1_f, b1_f, w2_f, b2_f)

    return jnp.transpose(out.reshape(H, B, W, C), (1, 0, 2, 3))


def resblock_reference(x_nhwc, w1, b1, w2, b2):
    """Pure-JAX reference using lax.conv (NHWC / HWIO)."""
    dn = lax.conv_dimension_numbers(x_nhwc.shape, w1.shape,
                                    ("NHWC", "HWIO", "NHWC"))
    r = lax.conv_general_dilated(x_nhwc, w1, (1, 1), "SAME",
                                 dimension_numbers=dn) + b1
    r = jnp.maximum(r, 0.0)
    r = lax.conv_general_dilated(r, w2, (1, 1), "SAME",
                                 dimension_numbers=dn) + b2
    r = jnp.maximum(r, 0.0)
    return x_nhwc + r


if __name__ == "__main__":
    # Small shapes consistent with ResBlock(in_dim=4) on a (2, 4, 16, 16) NCHW input.
    B, C, H, W = 2, 4, 16, 16

    key = jax.random.PRNGKey(0)
    kx, kw1, kb1, kw2, kb2 = jax.random.split(key, 5)

    x_nchw = jax.random.normal(kx, (B, C, H, W), jnp.float32)
    # Deterministic synthetic parameters (HWIO layout for the conv weights).
    w1 = jax.random.normal(kw1, (3, 3, C, C), jnp.float32) * 0.1
    b1 = jax.random.normal(kb1, (C,), jnp.float32) * 0.1
    w2 = jax.random.normal(kw2, (3, 3, C, C), jnp.float32) * 0.1
    b2 = jax.random.normal(kb2, (C,), jnp.float32) * 0.1

    # NCHW -> NHWC for the TPU kernel.
    x_nhwc = jnp.transpose(x_nchw, (0, 2, 3, 1))

    out = resblock_pallas(x_nhwc, w1, b1, w2, b2)
    out = jax.block_until_ready(out)

    ref = resblock_reference(x_nhwc, w1, b1, w2, b2)
    # Tolerance loosened vs the f32 reference because the conv matmuls now run with
    # bf16 operands (f32 accumulation), per the performance review.
    assert jnp.allclose(out, ref, atol=2e-2, rtol=2e-2), "mismatch vs reference"

    # Back to NCHW to match the PyTorch output convention (not strictly needed).
    _ = jnp.transpose(out, (0, 3, 1, 2))

    print("KERNEL_OK")
</pallas_src>

<mosaic_0001>
module attributes {stable_mosaic.version = 11 : i64} {
  func.func @_resblock_kernel(%arg0: memref<16x128xf32, #tpu.memory_space<vmem>>, %arg1: memref<128x384xbf16, #tpu.memory_space<vmem>>, %arg2: memref<1x128xf32, #tpu.memory_space<vmem>>, %arg3: memref<128x384xbf16, #tpu.memory_space<vmem>>, %arg4: memref<1x128xf32, #tpu.memory_space<vmem>>, %arg5: memref<16x128xf32, #tpu.memory_space<vmem>>) attributes {dimension_semantics = [], scalar_prefetch = 0 : i64, scratch_operands = 0 : i64, tpu.core_type = #tpu.core_type<tc>} {
    %c0 = arith.constant 0 : index
    %c0_0 = arith.constant 0 : index
    %0 = vector.load %arg0[%c0, %c0_0] : memref<16x128xf32, #tpu.memory_space<vmem>>, vector<16x128xf32>
    %1 = tpu.iota {dimensions = array<i32: 0>} : vector<16x16xi32>
    %2 = tpu.iota {dimensions = array<i32: 1>} : vector<16x16xi32>
    %c1_i32 = arith.constant 1 : i32
    %3 = vector.broadcast %c1_i32 : i32 to vector<16x16xi32>
    %4 = arith.addi %2, %3 : vector<16x16xi32>
    %5 = arith.cmpi eq, %1, %4 : vector<16x16xi32>
    %6 = arith.extui %5 : vector<16x16xi1> to vector<16x16xi32>
    %7 = arith.sitofp %6 : vector<16x16xi32> to vector<16x16xf32>
    %c1_i32_1 = arith.constant 1 : i32
    %8 = vector.broadcast %c1_i32_1 : i32 to vector<16x16xi32>
    %9 = arith.addi %1, %8 : vector<16x16xi32>
    %10 = arith.cmpi eq, %2, %9 : vector<16x16xi32>
    %11 = arith.extui %10 : vector<16x16xi1> to vector<16x16xi32>
    %12 = arith.sitofp %11 : vector<16x16xi32> to vector<16x16xf32>
    %13 = arith.truncf %0 : vector<16x128xf32> to vector<16x128xbf16>
    %c0_2 = arith.constant 0 : index
    %c0_3 = arith.constant 0 : index
    %14 = vector.load %arg1[%c0_2, %c0_3] : memref<128x384xbf16, #tpu.memory_space<vmem>>, vector<128x384xbf16>
    %cst = arith.constant dense<0.000000e+00> : vector<16x384xf32>
    %15 = tpu.matmul %13, %14, %cst {dimension_numbers = #tpu.dot_dimension_numbers<[1], [0], [0], [1], [0, 0, 1, 1], [], []>} : vector<16x128xbf16>, vector<128x384xbf16>, vector<16x384xf32> -> vector<16x384xf32>
    %16 = vector.extract_strided_slice %15 {offsets = [0, 0], sizes = [16, 128], strides = [1, 1]} : vector<16x384xf32> to vector<16x128xf32>
    %17 = vector.extract_strided_slice %15 {offsets = [0, 128], sizes = [16, 128], strides = [1, 1]} : vector<16x384xf32> to vector<16x128xf32>
    %18 = vector.extract_strided_slice %15 {offsets = [0, 256], sizes = [16, 128], strides = [1, 1]} : vector<16x384xf32> to vector<16x128xf32>
    %cst_4 = arith.constant dense<0.000000e+00> : vector<16x128xf32>
    %19 = tpu.matmul %7, %16, %cst_4 {dimension_numbers = #tpu.dot_dimension_numbers<[1], [0], [0], [1], [0, 0, 1, 1], [], []>} : vector<16x16xf32>, vector<16x128xf32>, vector<16x128xf32> -> vector<16x128xf32>
    %20 = arith.addf %19, %17 : vector<16x128xf32>
    %cst_5 = arith.constant dense<0.000000e+00> : vector<16x128xf32>
    %21 = tpu.matmul %12, %18, %cst_5 {dimension_numbers = #tpu.dot_dimension_numbers<[1], [0], [0], [1], [0, 0, 1, 1], [], []>} : vector<16x16xf32>, vector<16x128xf32>, vector<16x128xf32> -> vector<16x128xf32>
    %22 = arith.addf %20, %21 : vector<16x128xf32>
    %c0_6 = arith.constant 0 : index
    %c0_7 = arith.constant 0 : index
    %23 = vector.load %arg2[%c0_6, %c0_7] : memref<1x128xf32, #tpu.memory_space<vmem>>, vector<1x128xf32>
    %24 = vector.broadcast %23 : vector<1x128xf32> to vector<16x128xf32>
    %25 = arith.addf %22, %24 : vector<16x128xf32>
    %cst_8 = arith.constant 0.000000e+00 : f32
    %26 = vector.broadcast %cst_8 : f32 to vector<16x128xf32>
    %27 = arith.maximumf %25, %26 : vector<16x128xf32>
    %28 = arith.truncf %27 : vector<16x128xf32> to vector<16x128xbf16>
    %c0_9 = arith.constant 0 : index
    %c0_10 = arith.constant 0 : index
    %29 = vector.load %arg3[%c0_9, %c0_10] : memref<128x384xbf16, #tpu.memory_space<vmem>>, vector<128x384xbf16>
    %cst_11 = arith.constant dense<0.000000e+00> : vector<16x384xf32>
    %30 = tpu.matmul %28, %29, %cst_11 {dimension_numbers = #tpu.dot_dimension_numbers<[1], [0], [0], [1], [0, 0, 1, 1], [], []>} : vector<16x128xbf16>, vector<128x384xbf16>, vector<16x384xf32> -> vector<16x384xf32>
    %31 = vector.extract_strided_slice %30 {offsets = [0, 0], sizes = [16, 128], strides = [1, 1]} : vector<16x384xf32> to vector<16x128xf32>
    %32 = vector.extract_strided_slice %30 {offsets = [0, 128], sizes = [16, 128], strides = [1, 1]} : vector<16x384xf32> to vector<16x128xf32>
    %33 = vector.extract_strided_slice %30 {offsets = [0, 256], sizes = [16, 128], strides = [1, 1]} : vector<16x384xf32> to vector<16x128xf32>
    %cst_12 = arith.constant dense<0.000000e+00> : vector<16x128xf32>
    %34 = tpu.matmul %7, %31, %cst_12 {dimension_numbers = #tpu.dot_dimension_numbers<[1], [0], [0], [1], [0, 0, 1, 1], [], []>} : vector<16x16xf32>, vector<16x128xf32>, vector<16x128xf32> -> vector<16x128xf32>
    %35 = arith.addf %34, %32 : vector<16x128xf32>
    %cst_13 = arith.constant dense<0.000000e+00> : vector<16x128xf32>
    %36 = tpu.matmul %12, %33, %cst_13 {dimension_numbers = #tpu.dot_dimension_numbers<[1], [0], [0], [1], [0, 0, 1, 1], [], []>} : vector<16x16xf32>, vector<16x128xf32>, vector<16x128xf32> -> vector<16x128xf32>
    %37 = arith.addf %35, %36 : vector<16x128xf32>
    %c0_14 = arith.constant 0 : index
    %c0_15 = arith.constant 0 : index
    %38 = vector.load %arg4[%c0_14, %c0_15] : memref<1x128xf32, #tpu.memory_space<vmem>>, vector<1x128xf32>
    %39 = vector.broadcast %38 : vector<1x128xf32> to vector<16x128xf32>
    %40 = arith.addf %37, %39 : vector<16x128xf32>
    %cst_16 = arith.constant 0.000000e+00 : f32
    %41 = vector.broadcast %cst_16 : f32 to vector<16x128xf32>
    %42 = arith.maximumf %40, %41 : vector<16x128xf32>
    %43 = arith.addf %0, %42 : vector<16x128xf32>
    %c0_17 = arith.constant 0 : index
    %c0_18 = arith.constant 0 : index
    %44 = vector.load %arg5[%c0_17, %c0_18] : memref<16x128xf32, #tpu.memory_space<vmem>>, vector<16x128xf32>
    tpu.vector_store %arg5[%c0_17, %c0_18], %43 {strides = array<i32>} : memref<16x128xf32, #tpu.memory_space<vmem>>, vector<16x128xf32>,
    return
  }
}

</mosaic_0001>

<bundles_post_ra>
// kernel: tpu_custom_call.1
= control target key start
LH: loop header
LB: loop body
LE: loop exit
PB: predicated region body
PF: predicated region fallthrough
CT: control target
= control target key end

     0   :  { %10 = vsyncpa [#allocation3], 0  ;;  %s1458_s0 = inlined_call_operand.hbm [shape: f32[16,128], index: 0, kind: input, shape index: {}]   ;;  %s1459_s1 = inlined_call_operand.hbm [shape: bf16[128,384], index: 1, kind: input, shape index: {}]   ;;  %s1460_s2 = inlined_call_operand.vmem [shape: f32[1,128], index: 2, kind: input, shape index: {}]   ;;  %s1461_s3 = inlined_call_operand.hbm [shape: bf16[128,384], index: 3, kind: input, shape index: {}]   ;;  %s1462_s4 = inlined_call_operand.vmem [shape: f32[1,128], index: 4, kind: input, shape index: {}]   ;;  %s1463_s5 = inlined_call_operand.hbm [shape: f32[16,128], index: 5, kind: output, shape index: {}]  }
   0x1   :  { %11 = vsyncpa [#allocation6], 0 }
   0x2   :  { %12 = vsyncpa [#allocation4], 0  ;;  %s1285_s18 = smov [#allocation5]   ;;  %s1191_s22 = scalar_lea.hbm %s1459_s1, 3072 }
   0x3   :  { %s30_s19 = sshll.u32 %s1285_s18, 4  ;;  %p1192_p0 = scmp.ne.s32.totalorder %s1459_s1, %s1191_s22  ;;  %s31_s19 = int_to_ptr.vmem [resolvable:$true] %s30_s19 }
   0x4   :  { %p1195_p1 = scmp.lt.u32.totalorder %s1191_s22, %s1459_s1 }
   0x6   :  { %p1197_p2 = pnand %p1195_p1, %p1192_p0 }
   0x8   :  { %1200 = shalt.err (!%p1197_p2)
}
   0x9   :  { %s1201_s27 = scalar_lea.vmem %s31_s19, 3072  ;;  %p1206_p4 = scmp.lt.s32.totalorder %s31_s19, %s31_s19 }
   0xa   :  { %p1202_p3 = scmp.ne.s32.totalorder %s31_s19, %s1201_s27  ;;  %p1207_p5 = scmp.lt.s32.totalorder %s1201_s27, %s1201_s27 }
   0xc   :  { %p1208_p6 = por %p1207_p5, %p1206_p4 }
   0xe   :  { %p1209_p7 = pnand %p1208_p6, %p1202_p3 }
  0x10   :  { %1212 = shalt.err (!%p1209_p7)
}
  0x11   :  { %s1286_s28 = smov 192   ;;  %s1287_s29 = smov 12  }
  0x12   :  { %36 = dma.hbm_to_vmem [thread:$0]  %s1459_s1, 3072, %s31_s19, [#allocation6], %s1286_s28, %s1286_s28, %s1287_s29  }
  0x13   :  { %s1288_s7 = smov [#allocation2]   ;;  %s1213_s11 = scalar_lea.hbm %s1458_s0, 256 }
  0x14   :  { %s18_s8 = sshll.u32 %s1288_s7, 4  ;;  %p1214_p8 = scmp.ne.s32.totalorder %s1458_s0, %s1213_s11  ;;  %s19_s8 = int_to_ptr.vmem [resolvable:$true] %s18_s8 }
  0x15   :  { %p1217_p9 = scmp.lt.u32.totalorder %s1213_s11, %s1458_s0 }
  0x17   :  { %p1219_p10 = pnand %p1217_p9, %p1214_p8 }
  0x19   :  { %1222 = shalt.err (!%p1219_p10)
}
  0x1a   :  { %s1223_s16 = scalar_lea.vmem %s19_s8, 256  ;;  %p1228_p12 = scmp.lt.s32.totalorder %s19_s8, %s19_s8 }
  0x1b   :  { %p1224_p11 = scmp.ne.s32.totalorder %s19_s8, %s1223_s16  ;;  %p1229_p13 = scmp.lt.s32.totalorder %s1223_s16, %s1223_s16 }
  0x1d   :  { %p1230_p0 = por %p1229_p13, %p1228_p12 }
  0x1f   :  { %p1231_p1 = pnand %p1230_p0, %p1224_p11 }
  0x21   :  { %1234 = shalt.err (!%p1231_p1)
}
  0x22   :  { %s1289_s1 = smov 128   ;;  %s1290_s17 = smov 8  }
  0x23   :  { %24 = dma.hbm_to_vmem [thread:$0]  %s1458_s0, 256, %s19_s8, [#allocation3], %s1289_s1, %s1289_s1, %s1290_s17  }
  0x24   :  { %s1291_s20 = smov [#allocation7]   ;;  %s1235_s24 = scalar_lea.hbm %s1461_s3, 3072 }
  0x25   :  { %s44_s21 = sshll.u32 %s1291_s20, 4  ;;  %p1236_p2 = scmp.ne.s32.totalorder %s1461_s3, %s1235_s24  ;;  %s45_s21 = int_to_ptr.vmem [resolvable:$true] %s44_s21 }
  0x26   :  { %p1239_p3 = scmp.lt.u32.totalorder %s1235_s24, %s1461_s3 }
  0x28   :  { %p1241_p4 = pnand %p1239_p3, %p1236_p2 }
  0x2a   :  { %1244 = shalt.err (!%p1241_p4)
}
  0x2b   :  { %s1245_s6 = scalar_lea.vmem %s45_s21, 3072  ;;  %p1250_p6 = scmp.lt.s32.totalorder %s45_s21, %s45_s21 }
  0x2c   :  { %p1246_p5 = scmp.ne.s32.totalorder %s45_s21, %s1245_s6  ;;  %p1251_p7 = scmp.lt.s32.totalorder %s1245_s6, %s1245_s6 }
  0x2e   :  { %p1252_p8 = por %p1251_p7, %p1250_p6 }
  0x30   :  { %p1253_p9 = pnand %p1252_p8, %p1246_p5 }
  0x32   :  { %1256 = shalt.err (!%p1253_p9)
}
  0x33   :  { %50 = dma.hbm_to_vmem [thread:$0]  %s1461_s3, 3072, %s45_s21, [#allocation6], %s1286_s28, %s1286_s28, %s1287_s29  }
  0x34   :  { %1279 = dma.done.wait [#allocation3], 256  }
  0x35   :  { %1280 = vsyncadd [#allocation3], 4294967040 }
  0x36   :  { %1281 = dma.done.wait [#allocation6], 6144  }
  0x37   :  { %1282 = vsyncadd [#allocation6], 4294961152  ;;  %v1292_v0 = vmov 0.0   ;;  %vm1293_vm0 = vmmov 0   ;;  %v1294_v1 = vmov 0   ;;  %v1381_v25 = vld [vmem:[#allocation2] sm:$0xff]  ;;  %v65_v29 = vlaneseq }
  0x38   :  { %1032 = vmatprep.subr.bf16.mxu1 %v1292_v0  ;;  %1048 = vmatprep.mubr.msk.bf16.mxu1 %vm1293_vm0, %v1292_v0  ;;  %v1127_v2 = vld [vmem:[#allocation5 + $0x4] ss:$12 sps:$4 sm:$0xff]   ;;  %v1129_v3 = vld [vmem:[#allocation5 + $0x8] ss:$12 sps:$4 sm:$0xff]   ;;  %v1130_v4 = vld [vmem:[#allocation5] ss:$12 sps:$4 sm:$0xff]  }
  0x39   :  { %278 = vmatprep.mubr.bf16.mxu0 %v1294_v1  ;;  %246 = vmatprep.subr.bf16.mxu0 %v1127_v2  ;;  %v1131_v5 = vld [vmem:[#allocation5 + $0x1c] ss:$12 sps:$4 sm:$0xff]   ;;  %v1133_v6 = vld [vmem:[#allocation5 + $0x20] ss:$12 sps:$4 sm:$0xff]   ;;  %v1134_v7 = vld [vmem:[#allocation5 + $0x18] ss:$12 sps:$4 sm:$0xff]  }
  0x3a   :  { %1033 = vmatpush3.bf16.msra.mxu1 %v1129_v3  ;;  %247 = vmatpush1.bf16.msra.mxu0 %v1130_v4  ;;  %v1135_v8 = vld [vmem:[#allocation5 + $0x34] ss:$12 sps:$4 sm:$0xff]   ;;  %v1137_v9 = vld [vmem:[#allocation5 + $0x38] ss:$12 sps:$4 sm:$0xff]   ;;  %v1138_v10 = vld [vmem:[#allocation5 + $0x30] ss:$12 sps:$4 sm:$0xff]  }
  0x3b   :  { %1034 = vmatprep.subr.bf16.mxu1 %v1292_v0  ;;  %248 = vmatprep.subr.bf16.mxu0 %v1131_v5  ;;  %v1139_v11 = vld [vmem:[#allocation5 + $0x4c] ss:$12 sps:$4 sm:$0xff]   ;;  %v1141_v12 = vld [vmem:[#allocation5 + $0x50] ss:$12 sps:$4 sm:$0xff]   ;;  %v1142_v13 = vld [vmem:[#allocation5 + $0x48] ss:$12 sps:$4 sm:$0xff]  }
  0x3c   :  { %v1143_v14 = vld [vmem:[#allocation5 + $0x64] ss:$12 sps:$4 sm:$0xff]   ;;  %v1145_v15 = vld [vmem:[#allocation5 + $0x68] ss:$12 sps:$4 sm:$0xff]   ;;  %v1146_v16 = vld [vmem:[#allocation5 + $0x60] ss:$12 sps:$4 sm:$0xff]  }
  0x3d   :  { %v1147_v17 = vld [vmem:[#allocation5 + $0x7c] ss:$12 sps:$4 sm:$0xff]   ;;  %v1149_v18 = vld [vmem:[#allocation5 + $0x80] ss:$12 sps:$4 sm:$0xff]   ;;  %v1150_v19 = vld [vmem:[#allocation5 + $0x78] ss:$12 sps:$4 sm:$0xff]  }
  0x3e   :  { %1035 = vmatpush3.bf16.msra.mxu1 %v1133_v6  ;;  %249 = vmatpush1.bf16.msra.mxu0 %v1134_v7  ;;  %v1151_v20 = vld [vmem:[#allocation5 + $0x94] ss:$12 sps:$4 sm:$0xff]   ;;  %v1153_v21 = vld [vmem:[#allocation5 + $0x98] ss:$12 sps:$4 sm:$0xff]   ;;  %v1154_v22 = vld [vmem:[#allocation5 + $0x90] ss:$12 sps:$4 sm:$0xff]  }
  0x3f   :  { %1036 = vmatprep.subr.bf16.mxu1 %v1292_v0  ;;  %250 = vmatprep.subr.bf16.mxu0 %v1135_v8  ;;  %v1155_v23 = vld [vmem:[#allocation5 + $0xac] ss:$12 sps:$4 sm:$0xff]   ;;  %v1157_v24 = vld [vmem:[#allocation5 + $0xb0] ss:$12 sps:$4 sm:$0xff]   ;;  %v1158_v27 = vld [vmem:[#allocation5 + $0xa8] ss:$12 sps:$4 sm:$0xff]  }
  0x40   :  { %v1383_v26 = vld [vmem:[#allocation2 + $0x8] sm:$0xff]  ;;  %v66_v30 = vshrl.u32 %v65_v29, 7  ;;  %v69_v31 = vand.u32 127, %v65_v29  ;;  %vm330_vm2 = vcmask 130048   ;;  %v1161_v48 = vld [vmem:[#allocation7 + $0x4] ss:$12 sps:$4 sm:$0xff]  }
  0x41   :  { %v85_v28 = vpack.c.bf16 %v1383_v26, %v1381_v25  ;;  %v1162_v50 = vld [vmem:[#allocation7 + $0x8] ss:$12 sps:$4 sm:$0xff]   ;;  %v1159_v52 = vld [vmem:[#allocation7] ss:$12 sps:$4 sm:$0xff]   ;;  %v1163_v55 = vld [vmem:[#allocation7 + $0x18] ss:$12 sps:$4 sm:$0xff]  }
  0x42   :  { %1037 = vmatpush3.bf16.msra.mxu1 %v1137_v9  ;;  %251 = vmatpush1.bf16.msra.mxu0 %v1138_v10  ;;  %v70_v32 = vadd.s32 1, %v69_v31  ;;  %v67_v33 = vadd.s32 8, %v66_v30  ;;  %v77_v34 = vadd.s32 1, %v66_v30  ;;  %v1165_v53 = vld [vmem:[#allocation7 + $0x1c] ss:$12 sps:$4 sm:$0xff]   ;;  %s1295_s8 = smov [#allocation8]  }
  0x43   :  { %1038 = vmatprep.subr.bf16.mxu1 %v1292_v0  ;;  %252 = vmatprep.subr.bf16.mxu0 %v1139_v11  ;;  %v1166_v54 = vld [vmem:[#allocation7 + $0x20] ss:$12 sps:$4 sm:$0xff]   ;;  %v1170_v57 = vld [vmem:[#allocation7 + $0x38] ss:$12 sps:$4 sm:$0xff]   ;;  %v1167_v58 = vld [vmem:[#allocation7 + $0x30] ss:$12 sps:$4 sm:$0xff]  }
  0x44   :  { %vm71_vm1 = vcmp.eq.s32.totalorder %v66_v30, %v70_v32  ;;  %vm72_vm3 = vcmp.eq.s32.totalorder %v67_v33, %v70_v32  ;;  %v78_v35 = vadd.s32 1, %v67_v33  ;;  %vm79_vm4 = vcmp.eq.s32.totalorder %v69_v31, %v77_v34  ;;  %v1169_v56 = vld [vmem:[#allocation7 + $0x34] ss:$12 sps:$4 sm:$0xff]   ;;  %v1173_v59 = vld [vmem:[#allocation7 + $0x4c] ss:$12 sps:$4 sm:$0xff]   ;;  %s923_s9 = sshll.u32 %s1295_s8, 4  ;;  %s924_s9 = int_to_ptr.vmem [resolvable:$true] %s923_s9 }
  0x45   :  { %v1389_v36 = vsel %vm71_vm1, 1.0, %v1292_v0  ;;  %v1394_v37 = vsel %vm79_vm4, 1.0, %v1292_v0  ;;  %v1408_v51 = vsel %vm72_vm3, 1.0, %v1292_v0  ;;  %v1174_v60 = vld [vmem:[#allocation7 + $0x50] ss:$12 sps:$4 sm:$0xff]   ;;  %s1257_s10 = scalar_lea.vmem %s924_s9, 256  ;;  %p1262_p11 = scmp.lt.s32.totalorder %s924_s9, %s924_s9 }
  0x46   :  { %1039 = vmatpush3.bf16.msra.mxu1 %v1141_v12  ;;  %253 = vmatpush1.bf16.msra.mxu0 %v1142_v13  ;;  %vm80_vm5 = vcmp.eq.s32.totalorder %v69_v31, %v78_v35  ;;  %v1171_v61 = vld [vmem:[#allocation7 + $0x48] ss:$12 sps:$4 sm:$0xff]   ;;  %v1177_v62 = vld [vmem:[#allocation7 + $0x64] ss:$12 sps:$4 sm:$0xff]   ;;  %v1182_v4 = vld [vmem:[#allocation7 + $0x80] ss:$12 sps:$4 sm:$0xff]   ;;  %p1258_p10 = scmp.ne.s32.totalorder %s924_s9, %s1257_s10  ;;  %p1263_p12 = scmp.lt.s32.totalorder %s1257_s10, %s1257_s10 }
  0x47   :  { %1040 = vmatprep.subr.bf16.mxu1 %v1292_v0  ;;  %254 = vmatprep.subr.bf16.mxu0 %v1143_v14  ;;  %v1404_v49 = vsel %vm80_vm5, 1.0, %v1292_v0  ;;  %v1178_v63 = vld [vmem:[#allocation7 + $0x68] ss:$12 sps:$4 sm:$0xff]   ;;  %v1179_v3 = vld [vmem:[#allocation7 + $0x78] ss:$12 sps:$4 sm:$0xff]  }
  0x48   :  { %v1181_v2 = vld [vmem:[#allocation7 + $0x7c] ss:$12 sps:$4 sm:$0xff]   ;;  %v1185_v5 = vld [vmem:[#allocation7 + $0x94] ss:$12 sps:$4 sm:$0xff]   ;;  %v1186_v7 = vld [vmem:[#allocation7 + $0x98] ss:$12 sps:$4 sm:$0xff]   ;;  %p1264_p13 = por %p1263_p12, %p1262_p11 }
  0x49   :  { %v1183_v6 = vld [vmem:[#allocation7 + $0x90] ss:$12 sps:$4 sm:$0xff]   ;;  %v1189_v8 = vld [vmem:[#allocation7 + $0xac] ss:$12 sps:$4 sm:$0xff]   ;;  %v1187_v9 = vld [vmem:[#allocation7 + $0xa8] ss:$12 sps:$4 sm:$0xff]  }
  0x4a   :  { %1041 = vmatpush3.bf16.msra.mxu1 %v1145_v15  ;;  %255 = vmatpush1.bf16.msra.mxu0 %v1146_v16  ;;  %v1190_v10 = vld [vmem:[#allocation7 + $0xb0] ss:$12 sps:$4 sm:$0xff]   ;;  %p1265_p0 = pnand %p1264_p13, %p1258_p10 }
  0x4b   :  { %1042 = vmatprep.subr.bf16.mxu1 %v1292_v0  ;;  %256 = vmatprep.subr.bf16.mxu0 %v1147_v17  ;;  %v968_v17 = vld [vmem:[%s1460_s2] ss:$0 sm:$0xff] }
  0x4e   :  { %1043 = vmatpush3.bf16.msra.mxu1 %v1149_v18  ;;  %257 = vmatpush1.bf16.msra.mxu0 %v1150_v19 }
  0x4f   :  { %1044 = vmatprep.subr.bf16.mxu1 %v1292_v0  ;;  %258 = vmatprep.subr.bf16.mxu0 %v1151_v20 }
  0x52   :  { %1045 = vmatpush3.bf16.msra.mxu1 %v1153_v21  ;;  %259 = vmatpush1.bf16.msra.mxu0 %v1154_v22 }
  0x53   :  { %1046 = vmatprep.subr.bf16.mxu1 %v1292_v0  ;;  %260 = vmatprep.subr.bf16.mxu0 %v1155_v23 }
  0x56   :  { %1047 = vmatpush3.bf16.msra.mxu1 %v1157_v24  ;;  %261 = vmatpush1.bf16.msra.mxu0 %v1158_v27 }
  0x59   :  { %1049 = vmatmul.mubr.bf16.vlgmr.msra.gmra.mrb[0].mxu1 %v85_v28  ;;  %279 = vmatmul.mubr.bf16.vlgmr.msra.gmra.mrb[0].mxu0 %v85_v28 }
  0x5a   :  { %1056 = vmatprep.mubr.msk.f32.mxu0 %vm330_vm2, %v1389_v36  ;;  %1063 = vmatprep.mubr.msk.f32.mxu1 %vm330_vm2, %v1394_v37 }
 0x12c   :  { %v323_v38 = vpop.f32.mrb[0].mxu1  ;;  %v280_v39 = vpop.f32.mrb[0].mxu0 }
 0x12d   :  { %v1050_v40 = vpop.f32.mrb[1].mxu1  ;;  %v1398_v41 = vpop.f32.mrb[1].mxu0 }
 0x12e   :  { %v326_v42 = vpop.f32.mrb[2].mxu1  ;;  %v284_v44 = vpop.f32.mrb[2].mxu0 }
 0x12f   :  { %v1104_v43 = vpack.c.bf16 %v326_v42, %v323_v38  ;;  %v1051_v45 = vpop.f32.mrb[3].mxu1  ;;  %v1100_v46 = vpack.c.bf16 %v284_v44, %v280_v39  ;;  %v1400_v47 = vpop.f32.mrb[3].mxu0  ;;  %v997_v42 = vld [vmem:[%s1462_s4] ss:$0 sm:$0xff] }
 0x131   :  { %1105 = vmatprep.subr.bf16.mxu1 %v1104_v43  ;;  %1101 = vmatprep.subr.bf16.mxu0 %v1100_v46 }
 0x132   :  { %1107 = vmatpush3.bf16.msra.mxu1 %v1104_v43  ;;  %1103 = vmatpush3.bf16.msra.mxu0 %v1100_v46 }
 0x133   :  { %1066 = vmatprep.subr.bf16.mxu1 %v1292_v0  ;;  %667 = vmatprep.subr.bf16.mxu0 %v1161_v48 }
 0x135   :  { %1064 = vmatmul.mubr.msk.f32.vlgmr.msra.gmra.mrb[4].mxu1 %vm330_vm2, %v1404_v49  ;;  %1057 = vmatmul.mubr.msk.f32.vlgmr.msra.gmra.mrb[4].mxu0 %vm330_vm2, %v1408_v51 }
 0x136   :  { %1067 = vmatpush3.bf16.msra.mxu1 %v1162_v50  ;;  %668 = vmatpush1.bf16.msra.mxu0 %v1159_v52 }
 0x137   :  { %1068 = vmatprep.subr.bf16.mxu1 %v1292_v0  ;;  %669 = vmatprep.subr.bf16.mxu0 %v1165_v53 }
 0x138   :  { %699 = vmatprep.mubr.bf16.mxu0 %v1294_v1  ;;  %1082 = vmatprep.mubr.msk.bf16.mxu1 %vm1293_vm0, %v1292_v0  ;;  %v1175_v1 = vld [vmem:[#allocation7 + $0x60] ss:$12 sps:$4 sm:$0xff]  }
 0x13a   :  { %1069 = vmatpush3.bf16.msra.mxu1 %v1166_v54  ;;  %670 = vmatpush1.bf16.msra.mxu0 %v1163_v55 }
 0x13b   :  { %1070 = vmatprep.subr.bf16.mxu1 %v1292_v0  ;;  %671 = vmatprep.subr.bf16.mxu0 %v1169_v56 }
 0x13e   :  { %1071 = vmatpush3.bf16.msra.mxu1 %v1170_v57  ;;  %672 = vmatpush1.bf16.msra.mxu0 %v1167_v58 }
 0x13f   :  { %1072 = vmatprep.subr.bf16.mxu1 %v1292_v0  ;;  %673 = vmatprep.subr.bf16.mxu0 %v1173_v59 }
 0x142   :  { %1073 = vmatpush3.bf16.msra.mxu1 %v1174_v60  ;;  %674 = vmatpush1.bf16.msra.mxu0 %v1171_v61 }
 0x143   :  { %1074 = vmatprep.subr.bf16.mxu1 %v1292_v0  ;;  %675 = vmatprep.subr.bf16.mxu0 %v1177_v62 }
 0x146   :  { %1075 = vmatpush3.bf16.msra.mxu1 %v1178_v63  ;;  %676 = vmatpush1.bf16.msra.mxu0 %v1175_v1 }
 0x147   :  { %1076 = vmatprep.subr.bf16.mxu1 %v1292_v0  ;;  %677 = vmatprep.subr.bf16.mxu0 %v1181_v2 }
 0x14a   :  { %678 = vmatpush1.bf16.msra.mxu0 %v1179_v3  ;;  %1077 = vmatpush3.bf16.msra.mxu1 %v1182_v4 }
 0x14b   :  { %1078 = vmatprep.subr.bf16.mxu1 %v1292_v0  ;;  %679 = vmatprep.subr.bf16.mxu0 %v1185_v5 }
 0x14e   :  { %680 = vmatpush1.bf16.msra.mxu0 %v1183_v6  ;;  %1079 = vmatpush3.bf16.msra.mxu1 %v1186_v7 }
 0x14f   :  { %1080 = vmatprep.subr.bf16.mxu1 %v1292_v0  ;;  %681 = vmatprep.subr.bf16.mxu0 %v1189_v8 }
 0x152   :  { %682 = vmatpush1.bf16.msra.mxu0 %v1187_v9  ;;  %1081 = vmatpush3.bf16.msra.mxu1 %v1190_v10 }
 0x208   :  { %v1065_v11 = vpop.f32.mrb[4].mxu1  ;;  %v1058_v12 = vpop.f32.mrb[4].mxu0 }
 0x209   :  { %v484_v13 = vpop.f32.mrb[5].mxu1  ;;  %v409_v14 = vadd.f32 %v1058_v12, %v1400_v47  ;;  %v403_v15 = vpop.f32.mrb[5].mxu0 }
 0x20a   :  { %v404_v16 = vadd.f32 %v403_v15, %v1398_v41 }
 0x20b   :  { %v494_v18 = vadd.f32 %v1065_v11, %v409_v14 }
 0x20c   :  { %v493_v19 = vadd.f32 %v484_v13, %v404_v16 }
 0x20d   :  { %v503_v0 = vadd.f32 %v968_v17, %v494_v18 }
 0x20e   :  { %v502_v20 = vadd.f32 %v968_v17, %v493_v19 }
 0x20f   :  { %v505_v21 = vmax.f32 %v503_v0, 0.0 }
 0x210   :  { %v504_v22 = vmax.f32 %v502_v20, 0.0 }
 0x212   :  { %v506_v23 = vpack.c.bf16 %v505_v21, %v504_v22 }
 0x214   :  { %700 = vmatmul.mubr.bf16.vlgmr.msra.gmra.mrb[8].mxu0 %v506_v23  ;;  %1083 = vmatmul.mubr.bf16.vlgmr.msra.gmra.mrb[8].mxu1 %v506_v23 }
 0x215   :  { %1090 = vmatprep.mubr.msk.f32.mxu0 %vm330_vm2, %v1389_v36  ;;  %1097 = vmatprep.mubr.msk.f32.mxu1 %vm330_vm2, %v1394_v37 }
 0x2e7   :  { %v701_v24 = vpop.f32.mrb[8].mxu0  ;;  %v744_v27 = vpop.f32.mrb[8].mxu1 }
 0x2e8   :  { %v703_v28 = vpop.f32.mrb[9].mxu0  ;;  %v1084_v29 = vpop.f32.mrb[9].mxu1 }
 0x2e9   :  { %v705_v30 = vpop.f32.mrb[10].mxu0  ;;  %v747_v31 = vpop.f32.mrb[10].mxu1 }
 0x2ea   :  { %v1108_v32 = vpack.c.bf16 %v705_v30, %v701_v24  ;;  %v1112_v33 = vpack.c.bf16 %v747_v31, %v744_v27  ;;  %v707_v34 = vpop.f32.mrb[11].mxu0  ;;  %v1085_v35 = vpop.f32.mrb[11].mxu1 }
 0x2ec   :  { %1109 = vmatprep.subr.bf16.mxu0 %v1108_v32  ;;  %1113 = vmatprep.subr.bf16.mxu1 %v1112_v33 }
 0x2ed   :  { %1111 = vmatpush3.bf16.msra.mxu0 %v1108_v32  ;;  %1115 = vmatpush3.bf16.msra.mxu1 %v1112_v33 }
 0x2f0   :  { %1091 = vmatmul.mubr.msk.f32.vlgmr.msra.gmra.mrb[6].mxu0 %vm330_vm2, %v1408_v51  ;;  %1098 = vmatmul.mubr.msk.f32.vlgmr.msra.gmra.mrb[6].mxu1 %vm330_vm2, %v1404_v49 }
 0x3c3   :  { %v1092_v36 = vpop.f32.mrb[6].mxu0  ;;  %v1099_v37 = vpop.f32.mrb[6].mxu1 }
 0x3c4   :  { %v823_v38 = vadd.f32 %v1092_v36, %v707_v34  ;;  %v817_v39 = vpop.f32.mrb[7].mxu0  ;;  %v892_v40 = vpop.f32.mrb[7].mxu1 }
 0x3c5   :  { %v818_v41 = vadd.f32 %v817_v39, %v703_v28 }
 0x3c6   :  { %v902_v43 = vadd.f32 %v1099_v37, %v823_v38 }
 0x3c7   :  { %v901_v44 = vadd.f32 %v892_v40, %v818_v41 }
 0x3c8   :  { %v911_v45 = vadd.f32 %v997_v42, %v902_v43 }
 0x3c9   :  { %v910_v46 = vadd.f32 %v997_v42, %v901_v44 }
 0x3ca   :  { %v913_v47 = vmax.f32 %v911_v45, 0.0 }
 0x3cb   :  { %v912_v48 = vmax.f32 %v910_v46, 0.0 }
 0x3cc   :  { %v915_v49 = vadd.f32 %v913_v47, %v1383_v26 }
 0x3cd   :  { %v914_v50 = vadd.f32 %v912_v48, %v1381_v25 }
 0x3ce   :  { %917 = vst [vmem:[#allocation8 + $0x8] sm:$0xff] %v915_v49 }
 0x3cf   :  { %916 = vst [vmem:[#allocation8] sm:$0xff] %v914_v50 }
 0x3d0   :  { %1268 = shalt.err (!%p1265_p0)
}
 0x3d1   :  { %s1269_s12 = scalar_lea.hbm %s1463_s5, 256 }
 0x3d2   :  { %p1270_p1 = scmp.ne.s32.totalorder %s1463_s5, %s1269_s12  ;;  %p1273_p2 = scmp.lt.u32.totalorder %s1269_s12, %s1463_s5 }
 0x3d4   :  { %p1275_p3 = pnand %p1273_p2, %p1270_p1 }
 0x3d6   :  { %1278 = shalt.err (!%p1275_p3)
}
 0x3d7   :  { %929 = dma.vmem_to_hbm [thread:$0]  %s924_s9, 256, %s1463_s5, [#allocation4], %s1289_s1, %s1289_s1, %s1290_s17  }
 0x3d8   :  { %1283 = dma.done.wait [#allocation4], 256  }
 0x3d9   :  { %1284 = vsyncadd [#allocation4], 4294967040 }
 0x3da   :  { %933 = vsyncpa [#allocation3], 1 }
 0x3db   :  { %934 = vsyncpa [#allocation6], 1 }
 0x3dc   :  { %935 = vsyncpa [#allocation4], 1 }

</bundles_post_ra>
